<compile_context>
chip_gen: v7x
topology: tpu7x:2x2x1
jax: 0.10.0
libtpu: 0.0.40
codegen_flags: <defaults>
</compile_context>

<pallas_src>
import jax
import jax.numpy as jnp
from jax.experimental import pallas as pl
from jax.experimental.pallas import tpu as pltpu

LANE = 128  # TPU lane width; action_dim is padded up to this for dense stores.


# ----------------------------- Pallas kernel ------------------------------ #
def _qnet_kernel(
    x_ref,            # (TB, S)
    w1_ref, b1_ref,   # (S, H), (1, H)
    w2_ref, b2_ref,   # (H, H), (1, H)
    w3_ref, b3_ref,   # (H, A_pad), (1, A_pad)
    out_ref,          # (TB, A_pad)
):
    x = x_ref[...]

    # Layer 1: Linear + ReLU
    h1 = jnp.dot(x, w1_ref[...], preferred_element_type=jnp.float32) + b1_ref[...]
    h1 = jnp.maximum(h1, 0.0)

    # Layer 2: Linear + ReLU
    h2 = jnp.dot(h1, w2_ref[...], preferred_element_type=jnp.float32) + b2_ref[...]
    h2 = jnp.maximum(h2, 0.0)

    # Layer 3: Linear (Q-values, no activation).  Lane-dense (TB, 128) store.
    out_ref[...] = (
        jnp.dot(h2, w3_ref[...], preferred_element_type=jnp.float32) + b3_ref[...]
    ).astype(out_ref.dtype)


# ------------------------------- wrapper ----------------------------------- #
def qnetwork_forward(x, params, action_dim, *, batch_tile=256):
    """x: (B, state_dim) float32 -> (B, action_dim) float32."""
    B, S = x.shape
    H = params["w1"].shape[1]
    A_pad = params["w3"].shape[1]

    TB = min(batch_tile, B)
    assert B % TB == 0, f"batch {B} must be divisible by batch tile {TB}"

    const = lambda shape: pl.BlockSpec(shape, lambda i: (0, 0))  # grid-invariant

    in_specs = [
        pl.BlockSpec((TB, S), lambda i: (i, 0)),   # x, tiled over batch
        const((S, H)), const((1, H)),              # w1, b1
        const((H, H)), const((1, H)),              # w2, b2
        const((H, A_pad)), const((1, A_pad)),      # w3, b3 (lane-padded)
    ]
    out_spec = pl.BlockSpec((TB, A_pad), lambda i: (i, 0))

    flops = 2 * B * (S * H + H * H + H * A_pad)
    bytes_accessed = 4 * (
        B * S + B * A_pad                      # activations in / out
        + S * H + H + H * H + H + H * A_pad + A_pad  # weights + biases
    )

    out_padded = pl.pallas_call(
        _qnet_kernel,
        out_shape=jax.ShapeDtypeStruct((B, A_pad), jnp.float32),
        grid_spec=pltpu.PrefetchScalarGridSpec(
            num_scalar_prefetch=0,
            grid=(B // TB,),
            in_specs=in_specs,
            out_specs=out_spec,
        ),
        compiler_params=pltpu.CompilerParams(
            dimension_semantics=("parallel",),  # shards tiles across v7x's 2 TCs
        ),
        cost_estimate=pl.CostEstimate(
            flops=flops, transcendentals=0, bytes_accessed=bytes_accessed
        ),
    )(
        x,
        params["w1"], params["b1"],
        params["w2"], params["b2"],
        params["w3"], params["b3"],
    )
    return out_padded[:, :action_dim]


# -------------------------- parameter initialization ----------------------- #
def init_params(key, state_dim, hidden_dim, action_dim):
    """Mirror the PyTorch module: orthogonal weights, zero biases.

    Weights are stored transposed (in, out); the last layer is zero-padded
    along the output (lane) dimension to LANE columns so the kernel's output
    block is lane-dense.
    """
    a_pad = max(LANE, ((action_dim + LANE - 1) // LANE) * LANE)
    k1, k2, k3 = jax.random.split(key, 3)
    orth = jax.nn.initializers.orthogonal()

    w1 = orth(k1, (state_dim, hidden_dim), jnp.float32)
    w2 = orth(k2, (hidden_dim, hidden_dim), jnp.float32)
    w3_core = orth(k3, (hidden_dim, action_dim), jnp.float32)
    w3 = jnp.zeros((hidden_dim, a_pad), jnp.float32).at[:, :action_dim].set(w3_core)

    b1 = jnp.zeros((1, hidden_dim), jnp.float32)
    b2 = jnp.zeros((1, hidden_dim), jnp.float32)
    b3 = jnp.zeros((1, a_pad), jnp.float32)

    return dict(w1=w1, b1=b1, w2=w2, b2=b2, w3=w3, b3=b3)


def reference_forward(x, p, action_dim):
    h1 = jnp.maximum(x @ p["w1"] + p["b1"], 0.0)
    h2 = jnp.maximum(h1 @ p["w2"] + p["b2"], 0.0)
    return (h2 @ p["w3"] + p["b3"])[:, :action_dim]


# --------------------------------- main ------------------------------------ #
if __name__ == "__main__":
    # LunarLander-v2: state_dim=8, action_dim=4; args.hidden_dim=128.
    STATE_DIM, HIDDEN_DIM, ACTION_DIM = 8, 128, 4
    BATCH = 512          # 2 grid steps of TB=256 -> both v7x TensorCores busy.

    key = jax.random.PRNGKey(0)
    k_x, k_p = jax.random.split(key)

    x = jax.random.normal(k_x, (BATCH, STATE_DIM), jnp.float32)
    params = init_params(k_p, STATE_DIM, HIDDEN_DIM, ACTION_DIM)

    q = qnetwork_forward(x, params, ACTION_DIM)
    q = jax.block_until_ready(q)

    q_ref = reference_forward(x, params, ACTION_DIM)
    assert q.shape == (BATCH, ACTION_DIM)
    assert jnp.allclose(q, q_ref, atol=1e-4, rtol=1e-4)

    print("KERNEL_OK")
</pallas_src>

<mosaic_0001>
module attributes {stable_mosaic.version = 11 : i64} {
  func.func @_qnet_kernel(%arg0: i32, %arg1: memref<256x8xf32, #tpu.memory_space<vmem>>, %arg2: memref<8x128xf32, #tpu.memory_space<vmem>>, %arg3: memref<1x128xf32, #tpu.memory_space<vmem>>, %arg4: memref<128x128xf32, #tpu.memory_space<vmem>>, %arg5: memref<1x128xf32, #tpu.memory_space<vmem>>, %arg6: memref<128x128xf32, #tpu.memory_space<vmem>>, %arg7: memref<1x128xf32, #tpu.memory_space<vmem>>, %arg8: memref<256x128xf32, #tpu.memory_space<vmem>>) attributes {dimension_semantics = [#tpu.dimension_semantics<parallel>], iteration_bounds = array<i64: 2>, scalar_prefetch = 0 : i64, scratch_operands = 0 : i64, tpu.core_type = #tpu.core_type<tc>, window_params = [{transform_indices = @transform_0, window_bounds = array<i64: 256, 8>}, {pipeline_mode = #tpu.pipeline_mode<synchronous>, transform_indices = @transform_1, window_bounds = array<i64: 8, 128>}, {pipeline_mode = #tpu.pipeline_mode<synchronous>, transform_indices = @transform_2, window_bounds = array<i64: 1, 128>}, {pipeline_mode = #tpu.pipeline_mode<synchronous>, transform_indices = @transform_3, window_bounds = array<i64: 128, 128>}, {pipeline_mode = #tpu.pipeline_mode<synchronous>, transform_indices = @transform_4, window_bounds = array<i64: 1, 128>}, {pipeline_mode = #tpu.pipeline_mode<synchronous>, transform_indices = @transform_5, window_bounds = array<i64: 128, 128>}, {pipeline_mode = #tpu.pipeline_mode<synchronous>, transform_indices = @transform_6, window_bounds = array<i64: 1, 128>}, {transform_indices = @transform_7, window_bounds = array<i64: 256, 128>}]} {
    %c0 = arith.constant 0 : index
    %c0_0 = arith.constant 0 : index
    %0 = vector.load %arg1[%c0, %c0_0] : memref<256x8xf32, #tpu.memory_space<vmem>>, vector<256x8xf32>
    %c0_1 = arith.constant 0 : index
    %c0_2 = arith.constant 0 : index
    %1 = vector.load %arg2[%c0_1, %c0_2] : memref<8x128xf32, #tpu.memory_space<vmem>>, vector<8x128xf32>
    %cst = arith.constant dense<0.000000e+00> : vector<256x128xf32>
    %2 = tpu.matmul %0, %1, %cst {dimension_numbers = #tpu.dot_dimension_numbers<[1], [0], [0], [1], [0, 0, 1, 1], [], []>} : vector<256x8xf32>, vector<8x128xf32>, vector<256x128xf32> -> vector<256x128xf32>
    %c0_3 = arith.constant 0 : index
    %c0_4 = arith.constant 0 : index
    %3 = vector.load %arg3[%c0_3, %c0_4] : memref<1x128xf32, #tpu.memory_space<vmem>>, vector<1x128xf32>
    %4 = vector.broadcast %3 : vector<1x128xf32> to vector<256x128xf32>
    %5 = arith.addf %2, %4 : vector<256x128xf32>
    %cst_5 = arith.constant 0.000000e+00 : f32
    %6 = vector.broadcast %cst_5 : f32 to vector<256x128xf32>
    %7 = arith.maximumf %5, %6 : vector<256x128xf32>
    %c0_6 = arith.constant 0 : index
    %c0_7 = arith.constant 0 : index
    %8 = vector.load %arg4[%c0_6, %c0_7] : memref<128x128xf32, #tpu.memory_space<vmem>>, vector<128x128xf32>
    %cst_8 = arith.constant dense<0.000000e+00> : vector<256x128xf32>
    %9 = tpu.matmul %7, %8, %cst_8 {dimension_numbers = #tpu.dot_dimension_numbers<[1], [0], [0], [1], [0, 0, 1, 1], [], []>} : vector<256x128xf32>, vector<128x128xf32>, vector<256x128xf32> -> vector<256x128xf32>
    %c0_9 = arith.constant 0 : index
    %c0_10 = arith.constant 0 : index
    %10 = vector.load %arg5[%c0_9, %c0_10] : memref<1x128xf32, #tpu.memory_space<vmem>>, vector<1x128xf32>
    %11 = vector.broadcast %10 : vector<1x128xf32> to vector<256x128xf32>
    %12 = arith.addf %9, %11 : vector<256x128xf32>
    %cst_11 = arith.constant 0.000000e+00 : f32
    %13 = vector.broadcast %cst_11 : f32 to vector<256x128xf32>
    %14 = arith.maximumf %12, %13 : vector<256x128xf32>
    %c0_12 = arith.constant 0 : index
    %c0_13 = arith.constant 0 : index
    %15 = vector.load %arg6[%c0_12, %c0_13] : memref<128x128xf32, #tpu.memory_space<vmem>>, vector<128x128xf32>
    %cst_14 = arith.constant dense<0.000000e+00> : vector<256x128xf32>
    %16 = tpu.matmul %14, %15, %cst_14 {dimension_numbers = #tpu.dot_dimension_numbers<[1], [0], [0], [1], [0, 0, 1, 1], [], []>} : vector<256x128xf32>, vector<128x128xf32>, vector<256x128xf32> -> vector<256x128xf32>
    %c0_15 = arith.constant 0 : index
    %c0_16 = arith.constant 0 : index
    %17 = vector.load %arg7[%c0_15, %c0_16] : memref<1x128xf32, #tpu.memory_space<vmem>>, vector<1x128xf32>
    %18 = vector.broadcast %17 : vector<1x128xf32> to vector<256x128xf32>
    %19 = arith.addf %16, %18 : vector<256x128xf32>
    %c0_17 = arith.constant 0 : index
    %c0_18 = arith.constant 0 : index
    %20 = vector.load %arg8[%c0_17, %c0_18] : memref<256x128xf32, #tpu.memory_space<vmem>>, vector<256x128xf32>
    tpu.vector_store %arg8[%c0_17, %c0_18], %19 {strides = array<i32>} : memref<256x128xf32, #tpu.memory_space<vmem>>, vector<256x128xf32>,
    return
  }
  func.func @transform_0(%arg0: i32) -> (i32, i32) {
    %c0_i32 = arith.constant 0 : i32
    %c0_i32_0 = arith.constant 0 : i32
    return %arg0, %c0_i32 : i32, i32
  }
  func.func @transform_1(%arg0: i32) -> (i32, i32) {
    %c0_i32 = arith.constant 0 : i32
    %c0_i32_0 = arith.constant 0 : i32
    %c0_i32_1 = arith.constant 0 : i32
    return %c0_i32, %c0_i32_0 : i32, i32
  }
  func.func @transform_2(%arg0: i32) -> (i32, i32) {
    %c0_i32 = arith.constant 0 : i32
    %c0_i32_0 = arith.constant 0 : i32
    %c0_i32_1 = arith.constant 0 : i32
    return %c0_i32, %c0_i32_0 : i32, i32
  }
  func.func @transform_3(%arg0: i32) -> (i32, i32) {
    %c0_i32 = arith.constant 0 : i32
    %c0_i32_0 = arith.constant 0 : i32
    %c0_i32_1 = arith.constant 0 : i32
    return %c0_i32, %c0_i32_0 : i32, i32
  }
  func.func @transform_4(%arg0: i32) -> (i32, i32) {
    %c0_i32 = arith.constant 0 : i32
    %c0_i32_0 = arith.constant 0 : i32
    %c0_i32_1 = arith.constant 0 : i32
    return %c0_i32, %c0_i32_0 : i32, i32
  }
  func.func @transform_5(%arg0: i32) -> (i32, i32) {
    %c0_i32 = arith.constant 0 : i32
    %c0_i32_0 = arith.constant 0 : i32
    %c0_i32_1 = arith.constant 0 : i32
    return %c0_i32, %c0_i32_0 : i32, i32
  }
  func.func @transform_6(%arg0: i32) -> (i32, i32) {
    %c0_i32 = arith.constant 0 : i32
    %c0_i32_0 = arith.constant 0 : i32
    %c0_i32_1 = arith.constant 0 : i32
    return %c0_i32, %c0_i32_0 : i32, i32
  }
  func.func @transform_7(%arg0: i32) -> (i32, i32) {
    %c0_i32 = arith.constant 0 : i32
    %c0_i32_0 = arith.constant 0 : i32
    return %arg0, %c0_i32 : i32, i32
  }
}

</mosaic_0001>

<bundles_post_ra>
// kernel: tpu_custom_call.1
= control target key start
LH: loop header
LB: loop body
LE: loop exit
PB: predicated region body
PF: predicated region fallthrough
CT: control target
= control target key end

     0   :  { %12 = vsyncpa [#allocation3], 0  ;;  %s2337_s0 = inlined_call_operand.vmem [shape: f32[512,8], index: 0, kind: input, shape index: {}]   ;;  %s2338_s1 = inlined_call_operand.vmem [shape: f32[8,128], index: 1, kind: input, shape index: {}]   ;;  %s2339_s2 = inlined_call_operand.vmem [shape: f32[1,128], index: 2, kind: input, shape index: {}]   ;;  %s2340_s3 = inlined_call_operand.vmem [shape: f32[128,128], index: 3, kind: input, shape index: {}]   ;;  %s2341_s4 = inlined_call_operand.vmem [shape: f32[1,128], index: 4, kind: input, shape index: {}]   ;;  %s2342_s5 = inlined_call_operand.vmem [shape: f32[128,128], index: 5, kind: input, shape index: {}]   ;;  %s2343_s6 = inlined_call_operand.vmem [shape: f32[1,128], index: 6, kind: input, shape index: {}]   ;;  %s2344_s7 = inlined_call_operand.hbm [shape: f32[512,128], index: 7, kind: output, shape index: {}]  }
   0x1   :  { %14 = vsyncpa [#allocation3 + $0x1], 0  ;;  %s1911_s24 = smov 0   ;;  %s1913_s25 = smov 0  }
   0x2   :  { %s1915_s26 = smov 0   ;;  %s1917_s27 = smov 0  }
   0x3 LB: > { %s1932_s28 = sadd.s32 4294967295, %s1866_s27   ;;  %s1310_s29 = sadd.s32 4294967294, %s1866_s27   ;;  %s1866_s27 = sphi %s1917_s27, %s2350_s27   ;;  %s1862_s26 = sphi %s1915_s26, %s2349_s26   ;;  %s1858_s25 = sphi %s1913_s25, %s2348_s25   ;;  %s1854_s24 = sphi %s1911_s24, %s2347_s24  }
   0x4   : > { %s1936_s30 = sadd.s32 1, %s1866_s27   ;;  %s179_s8 = sadd.s32 1, %s1862_s26 }
   0x5   : > { %s176_s9 = ssub.s32 %s1866_s27, %s1936_s30  ;;  %p189_p0 = scmp.ne.s32.totalorder %s1862_s26, %s1858_s25 }
   0x6   : > { %p177_p1 = scmp.eq.s32.totalorder %s176_s9, 0  ;;  %p190_p2 = scmp.eq.s32.totalorder %s1932_s28, 1 }
   0x7   : > { %p195_p3 = scmp.ne.s32.totalorder %s1858_s25, %s1854_s24  ;;  %p196_p4 = scmp.eq.s32.totalorder %s1310_s29, 1 }
   0x8   : > { %s1947_s10 = scalar_select %p177_p1, %s1862_s26, %s179_s8  }
   0x9   : > { %p1949_p5 = por %p190_p2, %p189_p0  ;;  %p1953_p6 = por %p196_p4, %p195_p3 }
   0xa   : > { %p1313_p7 = scmp.ge.s32.totalorder %s1866_s27, 1  ;;  %p241_p8 = scmp.lt.s32.totalorder %s1866_s27, 3 }
   0xc   : > { %p242_p9 = pnand %p1313_p7, %p241_p8 }
   0xd   : > { %v312_v0 = vld [vmem:[%s2338_s1] sm:$0xff] (!%p242_p9)  ;;  %s1315_s15 = sshll.u32 (!%p242_p9), %s1932_s28, 5  ;;  %v675_v2 = vld [vmem:[%s2340_s3 + $0x8] sm:$0xff] (!%p242_p9)  ;;  %vm320_vm0 = vcmask (!%p242_p9), 64512   ;;  %v676_v7 = vld [vmem:[%s2340_s3 + $0x10] sm:$0xff] (!%p242_p9)  ;;  %s270_s19 = sand.u32 (!%p242_p9), 1, %s1858_s25  }
   0xe   : > { %245 = sbr.rel (%p242_p9) target bundleno = 752 (0x2f0), region = 48  ;;  %v674_v1 = vld [vmem:[%s2340_s3] sm:$0xff] (!%p242_p9)  ;;  %1487 = vmatprep.subr.mxu0 (!%p242_p9), %v312_v0  ;;  %p274_p10 = scmp.lt.s32.totalorder (!%p242_p9), %s1315_s15, 63  ;;  %1761 = vmatprep.subr.mxu1 (!%p242_p9), %v312_v0  ;;  %v677_v8 = vld [vmem:[%s2340_s3 + $0x18] sm:$0xff] (!%p242_p9)  ;;  %v679_v16 = vld [vmem:[%s2340_s3 + $0x28] sm:$0xff] (!%p242_p9) }
   0xf   : > { %v1697_v3 = vpack.c.bf16 (!%p242_p9), %v675_v2, %v674_v1  ;;  %1488 = vmatpush3.msra.mxu0 (!%p242_p9), %v312_v0  ;;  %1762 = vmatpush3.msra.mxu1 (!%p242_p9), %v312_v0  ;;  %v1701_v13 = vpack.c.bf16 (!%p242_p9), %v677_v8, %v676_v7  ;;  %v678_v15 = vld [vmem:[%s2340_s3 + $0x20] sm:$0xff] (!%p242_p9)  ;;  %v680_v22 = vld [vmem:[%s2340_s3 + $0x30] sm:$0xff] (!%p242_p9)  ;;  %v681_v23 = vld [vmem:[%s2340_s3 + $0x38] sm:$0xff] (!%p242_p9)  ;;  %s1357_s8 = sshll.u32 (!%p242_p9), %s1932_s28, 12  ;;  %s2296_s28 = scalar_lea.sflag (!%p242_p9), [#allocation3], %s270_s19 }
  0x10   : > { %v1705_v21 = vpack.c.bf16 (!%p242_p9), %v679_v16, %v678_v15  ;;  %v1709_v28 = vpack.c.bf16 (!%p242_p9), %v681_v23, %v680_v22  ;;  %v682_v29 = vld [vmem:[%s2340_s3 + $0x40] sm:$0xff] (!%p242_p9)  ;;  %v683_v30 = vld [vmem:[%s2340_s3 + $0x48] sm:$0xff] (!%p242_p9)  ;;  %v684_v36 = vld [vmem:[%s2340_s3 + $0x50] sm:$0xff] (!%p242_p9)  ;;  %s1868_s16 = smov (!%p242_p9), [#allocation2]  }
  0x11   : > { %1698 = vmatprep.subr.bf16.mxu1 (!%p242_p9), %v1697_v3  ;;  %v1713_v35 = vpack.c.bf16 (!%p242_p9), %v683_v30, %v682_v29  ;;  %v685_v37 = vld [vmem:[%s2340_s3 + $0x58] sm:$0xff] (!%p242_p9)  ;;  %v686_v43 = vld [vmem:[%s2340_s3 + $0x60] sm:$0xff] (!%p242_p9)  ;;  %v687_v44 = vld [vmem:[%s2340_s3 + $0x68] sm:$0xff] (!%p242_p9)  ;;  %s1808_s17 = sshll.u32 (!%p242_p9), %s1868_s16, 4  ;;  %s1809_s17 = int_to_ptr.vmem [resolvable:$false] %s1808_s17 }
  0x12   : > { %v1717_v42 = vpack.c.bf16 (!%p242_p9), %v685_v37, %v684_v36  ;;  %v1721_v49 = vpack.c.bf16 (!%p242_p9), %v687_v44, %v686_v43  ;;  %v688_v54 = vld [vmem:[%s2340_s3 + $0x70] sm:$0xff] (!%p242_p9)  ;;  %v689_v55 = vld [vmem:[%s2340_s3 + $0x78] sm:$0xff] (!%p242_p9)  ;;  %v954_v57 = vld [vmem:[%s2342_s5] sm:$0xff] (!%p242_p9)  ;;  %s1810_s18 = scalar_lea.vmem (!%p242_p9), %s1809_s17, 8192 }
  0x13   : > { %v1725_v56 = vpack.c.bf16 (!%p242_p9), %v689_v55, %v688_v54  ;;  %v955_v58 = vld [vmem:[%s2342_s5 + $0x8] sm:$0xff] (!%p242_p9)  ;;  %v956_v59 = vld [vmem:[%s2342_s5 + $0x10] sm:$0xff] (!%p242_p9)  ;;  %v957_v61 = vld [vmem:[%s2342_s5 + $0x18] sm:$0xff] (!%p242_p9) }
  0x14   : > { %v1729_v60 = vpack.c.bf16 (!%p242_p9), %v955_v58, %v954_v57  ;;  %v1733_v62 = vpack.c.bf16 (!%p242_p9), %v957_v61, %v956_v59  ;;  %v958_v63 = vld [vmem:[%s2342_s5 + $0x20] sm:$0xff] (!%p242_p9)  ;;  %v959_v0 = vld [vmem:[%s2342_s5 + $0x28] sm:$0xff] (!%p242_p9)  ;;  %v960_v2 = vld [vmem:[%s2342_s5 + $0x30] sm:$0xff] (!%p242_p9) }
  0x15   : > { %s2352_s15 = smov (!%p274_p10, %s1315_s15), 63  ;;  %v1737_v1 = vpack.c.bf16 %v959_v0, %v958_v63  ;;  %v964_v8 = vld [vmem:[%s2342_s5 + $0x50] sm:$0xff] }
  0x16   : > { %s1316_s20 = sshll.u32 %s2352_s15, 3  ;;  %1730 = vmatprep.subr.bf16.mxu0 %v1729_v60 }
  0x17   : > { %s1972_s23 = scalar_lea.vmem %s2337_s0, %s1316_s20  ;;  %s1314_s20 = sshll.u32 %s270_s19, 8 }
  0x18   : > { %v280_v4 = vld [vmem:[%s1972_s23] sm:$0xff]  ;;  %v281_v5 = vld [vmem:[%s1972_s23 + $0x8] sm:$0xff]  ;;  %v282_v6 = vld [vmem:[%s1972_s23 + $0x10] sm:$0xff]  ;;  %s2221_s29 = scalar_lea.vmem [#allocation2], %s1314_s20 }
  0x19   : > { %1489 = vmatprep.mubr.msk.f32.mxu0 %vm320_vm0, %v280_v4  ;;  %v283_v9 = vld [vmem:[%s1972_s23 + $0x18] sm:$0xff]  ;;  %v284_v10 = vld [vmem:[%s1972_s23 + $0x20] sm:$0xff]  ;;  %v297_v12 = vld [vmem:[%s1972_s23 + $0x88] sm:$0xff]  ;;  %s1248_s9 = sshll.u32 %s2221_s29, 4  ;;  %s2289_s9 = int_to_ptr.vmem [resolvable:$true] %s1248_s9 }
  0x1a   : > { %1490 = vmatmul.mubr.msk.f32.vlgmr.msra.gmra.mrb[0].mxu0 %vm320_vm0, %v281_v5  ;;  %v296_v11 = vld [vmem:[%s1972_s23 + $0x80] sm:$0xff]  ;;  %v298_v14 = vld [vmem:[%s1972_s23 + $0x90] sm:$0xff]  ;;  %v285_v17 = vld [vmem:[%s1972_s23 + $0x28] sm:$0xff]  ;;  %s1804_s15 = scalar_lea.vmem %s2289_s9, 4096  ;;  %p1811_p0 = scmp.lt.s32.totalorder %s2289_s9, %s1809_s17 }
  0x1b   : > { %1492 = vmatprep.mubr.msk.f32.mxu0 %vm320_vm0, %v282_v6  ;;  %1513 = vmatprep.mubr.msk.f32.mxu1 %vm320_vm0, %v296_v11  ;;  %v286_v18 = vld [vmem:[%s1972_s23 + $0x30] sm:$0xff]  ;;  %v299_v19 = vld [vmem:[%s1972_s23 + $0x98] sm:$0xff]  ;;  %v300_v20 = vld [vmem:[%s1972_s23 + $0xa0] sm:$0xff]  ;;  %p1805_p11 = scmp.ne.s32.totalorder %s2289_s9, %s1804_s15  ;;  %p1812_p1 = scmp.lt.s32.totalorder %s1810_s18, %s1804_s15 }
  0x1c   : > { %1514 = vmatmul.mubr.msk.f32.vlgmr.msra.gmra.mrb[0].mxu1 %vm320_vm0, %v297_v12  ;;  %v287_v24 = vld [vmem:[%s1972_s23 + $0x38] sm:$0xff]  ;;  %v288_v25 = vld [vmem:[%s1972_s23 + $0x40] sm:$0xff]  ;;  %v301_v26 = vld [vmem:[%s1972_s23 + $0xa8] sm:$0xff]  ;;  %1732 = vmatpush3.bf16.msra.mxu0 %v1729_v60 }
  0x1d   : > { %1516 = vmatprep.mubr.msk.f32.mxu1 %vm320_vm0, %v298_v14  ;;  %1700 = vmatpush3.bf16.msra.mxu1 %v1697_v3  ;;  %v302_v27 = vld [vmem:[%s1972_s23 + $0xb0] sm:$0xff]  ;;  %v289_v31 = vld [vmem:[%s1972_s23 + $0x48] sm:$0xff]  ;;  %v303_v33 = vld [vmem:[%s1972_s23 + $0xb8] sm:$0xff]  ;;  %p1806_p12 = pnand %p1805_p11, %p1949_p5  ;;  %p1813_p2 = por %p1812_p1, %p1811_p0 }
  0x1e   : > { %1493 = vmatmul.mubr.msk.f32.gmra.mrb[2].mxu0 %vm320_vm0, %v283_v9  ;;  %1702 = vmatprep.subr.bf16.mxu1 %v1701_v13  ;;  %v290_v32 = vld [vmem:[%s1972_s23 + $0x50] sm:$0xff]  ;;  %v304_v34 = vld [vmem:[%s1972_s23 + $0xc0] sm:$0xff]  ;;  %v291_v38 = vld [vmem:[%s1972_s23 + $0x58] sm:$0xff] }
  0x1f   : > { %1495 = vmatprep.mubr.msk.f32.mxu0 %vm320_vm0, %v284_v10  ;;  %v292_v39 = vld [vmem:[%s1972_s23 + $0x60] sm:$0xff]  ;;  %v305_v40 = vld [vmem:[%s1972_s23 + $0xc8] sm:$0xff]  ;;  %v306_v41 = vld [vmem:[%s1972_s23 + $0xd0] sm:$0xff]  ;;  %1734 = vmatprep.subr.bf16.mxu0 %v1733_v62  ;;  %p1807_p13 = pneg %p1806_p12 }
  0x20   : > { %1517 = vmatmul.mubr.msk.f32.gmra.mrb[2].mxu1 %vm320_vm0, %v299_v19  ;;  %v293_v45 = vld [vmem:[%s1972_s23 + $0x68] sm:$0xff]  ;;  %v294_v46 = vld [vmem:[%s1972_s23 + $0x70] sm:$0xff]  ;;  %v307_v47 = vld [vmem:[%s1972_s23 + $0xd8] sm:$0xff]  ;;  %1736 = vmatpush3.bf16.msra.mxu0 %v1733_v62 }
  0x21   : > { %1519 = vmatprep.mubr.msk.f32.mxu1 %vm320_vm0, %v300_v20  ;;  %1704 = vmatpush3.bf16.msra.mxu1 %v1701_v13  ;;  %v308_v48 = vld [vmem:[%s1972_s23 + $0xe0] sm:$0xff]  ;;  %v295_v50 = vld [vmem:[%s1972_s23 + $0x78] sm:$0xff]  ;;  %v309_v51 = vld [vmem:[%s1972_s23 + $0xe8] sm:$0xff]  ;;  %p1814_p3 = pnand %p1813_p2, %p1807_p13 }
  0x22   : > { %1496 = vmatmul.mubr.msk.f32.gmra.mrb[4].mxu0 %vm320_vm0, %v285_v17  ;;  %1706 = vmatprep.subr.bf16.mxu1 %v1705_v21  ;;  %v310_v52 = vld [vmem:[%s1972_s23 + $0xf0] sm:$0xff]  ;;  %v311_v53 = vld [vmem:[%s1972_s23 + $0xf8] sm:$0xff]  ;;  %v962_v5 = vld [vmem:[%s2342_s5 + $0x40] sm:$0xff]  ;;  %s2287_s23 = scalar_lea.hbm %s2344_s7, %s1357_s8 }
  0x23   : > { %1498 = vmatprep.mubr.msk.f32.mxu0 %vm320_vm0, %v286_v18  ;;  %v961_v3 = vld [vmem:[%s2342_s5 + $0x38] sm:$0xff]  ;;  %1738 = vmatprep.subr.bf16.mxu0 %v1737_v1  ;;  %v963_v6 = vld [vmem:[%s2342_s5 + $0x48] sm:$0xff]  ;;  %v966_v11 = vld [vmem:[%s2342_s5 + $0x60] sm:$0xff] }
  0x24   : > { %1520 = vmatmul.mubr.msk.f32.gmra.mrb[4].mxu1 %vm320_vm0, %v301_v26  ;;  %v1741_v4 = vpack.c.bf16 %v961_v3, %v960_v2  ;;  %1740 = vmatpush3.bf16.msra.mxu0 %v1737_v1  ;;  %v1745_v7 = vpack.c.bf16 %v963_v6, %v962_v5  ;;  %v965_v9 = vld [vmem:[%s2342_s5 + $0x58] sm:$0xff]  ;;  %v967_v12 = vld [vmem:[%s2342_s5 + $0x68] sm:$0xff]  ;;  %v2125_v14 = vld [vmem:[%s2339_s2] ss:$0 sm:$0xff] }
  0x25   : > { %1522 = vmatprep.mubr.msk.f32.mxu1 %vm320_vm0, %v302_v27  ;;  %1708 = vmatpush3.bf16.msra.mxu1 %v1705_v21  ;;  %v1749_v10 = vpack.c.bf16 %v965_v9, %v964_v8  ;;  %v1753_v13 = vpack.c.bf16 %v967_v12, %v966_v11 }
  0x26   : > { %1499 = vmatmul.mubr.msk.f32.gmra.mrb[6].mxu0 %vm320_vm0, %v287_v24  ;;  %1710 = vmatprep.subr.bf16.mxu1 %v1709_v28 }
  0x27   : > { %1501 = vmatprep.mubr.msk.f32.mxu0 %vm320_vm0, %v288_v25  ;;  %1742 = vmatprep.subr.bf16.mxu0 %v1741_v4 }
  0x28   : > { %1523 = vmatmul.mubr.msk.f32.gmra.mrb[6].mxu1 %vm320_vm0, %v303_v33  ;;  %1744 = vmatpush3.bf16.msra.mxu0 %v1741_v4 }
  0x29   : > { %1525 = vmatprep.mubr.msk.f32.mxu1 %vm320_vm0, %v304_v34  ;;  %1712 = vmatpush3.bf16.msra.mxu1 %v1709_v28 }
  0x2a   : > { %1502 = vmatmul.mubr.msk.f32.gmra.mrb[8].mxu0 %vm320_vm0, %v289_v31  ;;  %1714 = vmatprep.subr.bf16.mxu1 %v1713_v35 }
  0x2b   : > { %1504 = vmatprep.mubr.msk.f32.mxu0 %vm320_vm0, %v290_v32  ;;  %1746 = vmatprep.subr.bf16.mxu0 %v1745_v7 }
  0x2c   : > { %1526 = vmatmul.mubr.msk.f32.gmra.mrb[8].mxu1 %vm320_vm0, %v305_v40  ;;  %1748 = vmatpush3.bf16.msra.mxu0 %v1745_v7 }
  0x2d   : > { %1528 = vmatprep.mubr.msk.f32.mxu1 %vm320_vm0, %v306_v41  ;;  %1716 = vmatpush3.bf16.msra.mxu1 %v1713_v35 }
  0x2e   : > { %1505 = vmatmul.mubr.msk.f32.gmra.mrb[10].mxu0 %vm320_vm0, %v291_v38  ;;  %1718 = vmatprep.subr.bf16.mxu1 %v1717_v42 }
  0x2f   : > { %1507 = vmatprep.mubr.msk.f32.mxu0 %vm320_vm0, %v292_v39  ;;  %1750 = vmatprep.subr.bf16.mxu0 %v1749_v10 }
  0x30   : > { %1529 = vmatmul.mubr.msk.f32.gmra.mrb[10].mxu1 %vm320_vm0, %v307_v47  ;;  %1752 = vmatpush3.bf16.msra.mxu0 %v1749_v10 }
  0x31   : > { %1531 = vmatprep.mubr.msk.f32.mxu1 %vm320_vm0, %v308_v48  ;;  %1720 = vmatpush3.bf16.msra.mxu1 %v1717_v42 }
  0x32   : > { %1508 = vmatmul.mubr.msk.f32.gmra.mrb[12].mxu0 %vm320_vm0, %v293_v45  ;;  %1722 = vmatprep.subr.bf16.mxu1 %v1721_v49 }
  0x33   : > { %1510 = vmatprep.mubr.msk.f32.mxu0 %vm320_vm0, %v294_v46  ;;  %1754 = vmatprep.subr.bf16.mxu0 %v1753_v13 }
  0x34   : > { %1532 = vmatmul.mubr.msk.f32.gmra.mrb[12].mxu1 %vm320_vm0, %v309_v51  ;;  %1756 = vmatpush3.bf16.msra.mxu0 %v1753_v13 }
  0x35   : > { %1534 = vmatprep.mubr.msk.f32.mxu1 %vm320_vm0, %v310_v52  ;;  %1724 = vmatpush3.bf16.msra.mxu1 %v1721_v49 }
  0x36   : > { %1511 = vmatmul.mubr.msk.f32.gmra.mrb[14].mxu0 %vm320_vm0, %v295_v50  ;;  %1726 = vmatprep.subr.bf16.mxu1 %v1725_v56 }
  0x38   : > { %1535 = vmatmul.mubr.msk.f32.gmra.mrb[14].mxu1 %vm320_vm0, %v311_v53 }
  0x39   : > { %1728 = vmatpush3.bf16.msra.mxu1 %v1725_v56 }
  0xed   : > { %v1491_v15 = vpop.f32.mrb[0].mxu0 }
  0xee   : > { %v489_v16 = vadd.f32 %v1491_v15, %v2125_v14  ;;  %v483_v17 = vpop.f32.mrb[1].mxu0 }
  0xef   : > { %v484_v18 = vadd.f32 %v2125_v14, %v483_v17  ;;  %v2130_v24 = vpop.f32.mrb[0].mxu1 }
  0xf0   : > { %v643_v21 = vmax.f32 %v489_v16, 0.0  ;;  %v563_v26 = vpop.f32.mrb[1].mxu1  ;;  %v569_v17 = vadd.f32 %v2130_v24, %v2125_v14 }
  0xf1   : > { %v642_v19 = vmax.f32 %v484_v18, 0.0  ;;  %v1494_v20 = vpop.f32.mrb[2].mxu0  ;;  %v564_v5 = vadd.f32 %v2125_v14, %v563_v26 }
  0xf2   : > { %v499_v22 = vadd.f32 %v1494_v20, %v2125_v14  ;;  %v493_v23 = vpop.f32.mrb[3].mxu0 }
  0xf3   : > { %v494_v25 = vadd.f32 %v2125_v14, %v493_v23  ;;  %1569 = vmatprep.mubr.f32.mxu1 %v642_v19  ;;  %v2134_v32 = vpop.f32.mrb[2].mxu1  ;;  %v658_v13 = vmax.f32 %v564_v5, 0.0 }
  0xf4   : > { %1570 = vmatmul.mubr.f32.vlgmr.msra.gmra.mrb[16].mxu1 %v643_v21  ;;  %v645_v29 = vmax.f32 %v499_v22, 0.0  ;;  %v573_v34 = vpop.f32.mrb[3].mxu1  ;;  %v659_v22 = vmax.f32 %v569_v17, 0.0  ;;  %v579_v23 = vadd.f32 %v2134_v32, %v2125_v14 }
  0xf5   : > { %v644_v27 = vmax.f32 %v494_v25, 0.0  ;;  %v1497_v28 = vpop.f32.mrb[4].mxu0  ;;  %v574_v15 = vadd.f32 %v2125_v14, %v573_v34 }
  0xf6   : > { %v509_v30 = vadd.f32 %v1497_v28, %v2125_v14  ;;  %v503_v31 = vpop.f32.mrb[5].mxu0 }
  0xf7   : > { %v504_v33 = vadd.f32 %v2125_v14, %v503_v31  ;;  %1572 = vmatprep.mubr.f32.mxu1 %v644_v27  ;;  %v2138_v40 = vpop.f32.mrb[4].mxu1  ;;  %v660_v20 = vmax.f32 %v574_v15, 0.0  ;;  %v661_v27 = vmax.f32 %v579_v23, 0.0 }
  0xf8   : > { %1573 = vmatmul.mubr.f32.gmra.mrb[18].mxu1 %v645_v29  ;;  %v647_v37 = vmax.f32 %v509_v30, 0.0  ;;  %v583_v42 = vpop.f32.mrb[5].mxu1  ;;  %v589_v24 = vadd.f32 %v2138_v40, %v2125_v14 }
  0xf9   : > { %v646_v35 = vmax.f32 %v504_v33, 0.0  ;;  %v1500_v36 = vpop.f32.mrb[6].mxu0  ;;  %v584_v21 = vadd.f32 %v2125_v14, %v583_v42 }
  0xfa   : > { %v519_v38 = vadd.f32 %v1500_v36, %v2125_v14  ;;  %v513_v39 = vpop.f32.mrb[7].mxu0  ;;  %v663_v30 = vmax.f32 %v589_v24, 0.0 }
  0xfb   : > { %v514_v41 = vadd.f32 %v2125_v14, %v513_v39  ;;  %1575 = vmatprep.mubr.f32.mxu1 %v646_v35  ;;  %v1524_v48 = vpop.f32.mrb[6].mxu1  ;;  %v662_v25 = vmax.f32 %v584_v21, 0.0 }
  0xfc   : > { %1576 = vmatmul.mubr.f32.gmra.mrb[20].mxu1 %v647_v37  ;;  %v649_v45 = vmax.f32 %v519_v38, 0.0  ;;  %v593_v50 = vpop.f32.mrb[7].mxu1  ;;  %v599_v31 = vadd.f32 %v1524_v48, %v2125_v14  ;;  %v968_v48 = vld [vmem:[%s2342_s5 + $0x70] sm:$0xff] }
  0xfd   : > { %v648_v43 = vmax.f32 %v514_v41, 0.0  ;;  %v1503_v44 = vpop.f32.mrb[8].mxu0  ;;  %v594_v26 = vadd.f32 %v2125_v14, %v593_v50 }
  0xfe   : > { %v529_v46 = vadd.f32 %v1503_v44, %v2125_v14  ;;  %v523_v47 = vpop.f32.mrb[9].mxu0  ;;  %v665_v34 = vmax.f32 %v599_v31, 0.0 }
  0xff   : > { %v524_v49 = vadd.f32 %v2125_v14, %v523_v47  ;;  %1578 = vmatprep.mubr.f32.mxu1 %v648_v43  ;;  %v1527_v56 = vpop.f32.mrb[8].mxu1  ;;  %v664_v28 = vmax.f32 %v594_v26, 0.0 }
 0x100   : > { %1579 = vmatmul.mubr.f32.gmra.mrb[22].mxu1 %v649_v45  ;;  %v651_v53 = vmax.f32 %v529_v46, 0.0  ;;  %v603_v58 = vpop.f32.mrb[9].mxu1  ;;  %v609_v35 = vadd.f32 %v1527_v56, %v2125_v14 }
 0x101   : > { %v650_v51 = vmax.f32 %v524_v49, 0.0  ;;  %v1506_v52 = vpop.f32.mrb[10].mxu0  ;;  %v604_v29 = vadd.f32 %v2125_v14, %v603_v58  ;;  %v969_v49 = vld [vmem:[%s2342_s5 + $0x78] sm:$0xff] }
 0x102   : > { %v539_v54 = vadd.f32 %v1506_v52, %v2125_v14  ;;  %v533_v55 = vpop.f32.mrb[11].mxu0  ;;  %v667_v38 = vmax.f32 %v609_v35, 0.0  ;;  %v1757_v50 = vpack.c.bf16 %v969_v49, %v968_v48 }
 0x103   : > { %v534_v57 = vadd.f32 %v2125_v14, %v533_v55  ;;  %1581 = vmatprep.mubr.f32.mxu1 %v650_v51  ;;  %v1530_v0 = vpop.f32.mrb[10].mxu1  ;;  %v666_v33 = vmax.f32 %v604_v29, 0.0  ;;  %v2177_v51 = vld [vmem:[%s2341_s4] ss:$0 sm:$0xff] }
 0x104   : > { %1582 = vmatmul.mubr.f32.gmra.mrb[24].mxu1 %v651_v53  ;;  %v653_v61 = vmax.f32 %v539_v54, 0.0  ;;  %v613_v2 = vpop.f32.mrb[11].mxu1  ;;  %v619_v39 = vadd.f32 %v1530_v0, %v2125_v14  ;;  %1758 = vmatprep.subr.bf16.mxu0 %v1757_v50 }
 0x105   : > { %v652_v59 = vmax.f32 %v534_v57, 0.0  ;;  %v1509_v60 = vpop.f32.mrb[12].mxu0  ;;  %v614_v32 = vadd.f32 %v2125_v14, %v613_v2  ;;  %1760 = vmatpush3.bf16.msra.mxu0 %v1757_v50 }
 0x106   : > { %v549_v62 = vadd.f32 %v1509_v60, %v2125_v14  ;;  %v543_v63 = vpop.f32.mrb[13].mxu0  ;;  %v669_v42 = vmax.f32 %v619_v39, 0.0 }
 0x107   : > { %v544_v1 = vadd.f32 %v2125_v14, %v543_v63  ;;  %1584 = vmatprep.mubr.f32.mxu1 %v652_v59  ;;  %v1533_v9 = vpop.f32.mrb[12].mxu1  ;;  %v668_v36 = vmax.f32 %v614_v32, 0.0 }
 0x108   : > { %1585 = vmatmul.mubr.f32.gmra.mrb[26].mxu1 %v653_v61  ;;  %v655_v6 = vmax.f32 %v549_v62, 0.0  ;;  %v623_v11 = vpop.f32.mrb[13].mxu1  ;;  %v629_v43 = vadd.f32 %v1533_v9, %v2125_v14 }
 0x109   : > { %v654_v3 = vmax.f32 %v544_v1, 0.0  ;;  %v1512_v4 = vpop.f32.mrb[14].mxu0  ;;  %v624_v37 = vadd.f32 %v2125_v14, %v623_v11 }
 0x10a   : > { %v559_v7 = vadd.f32 %v1512_v4, %v2125_v14  ;;  %v553_v8 = vpop.f32.mrb[15].mxu0  ;;  %v671_v45 = vmax.f32 %v629_v43, 0.0 }
 0x10b   : > { %v554_v10 = vadd.f32 %v2125_v14, %v553_v8  ;;  %1587 = vmatprep.mubr.f32.mxu1 %v654_v3  ;;  %v1536_v18 = vpop.f32.mrb[14].mxu1  ;;  %v670_v40 = vmax.f32 %v624_v37, 0.0 }
 0x10c   : > { %1588 = vmatmul.mubr.f32.gmra.mrb[28].mxu1 %v655_v6  ;;  %v657_v16 = vmax.f32 %v559_v7, 0.0  ;;  %v633_v19 = vpop.f32.mrb[15].mxu1  ;;  %v639_v46 = vadd.f32 %v1536_v18, %v2125_v14 }
 0x10d   : > { %v656_v12 = vmax.f32 %v554_v10, 0.0  ;;  %v634_v41 = vadd.f32 %v2125_v14, %v633_v19 }
 0x10e   : > { %v673_v47 = vmax.f32 %v639_v46, 0.0 }
 0x10f   : > { %1590 = vmatprep.mubr.f32.mxu1 %v656_v12  ;;  %v672_v44 = vmax.f32 %v634_v41, 0.0 }
 0x110   : > { %1591 = vmatmul.mubr.f32.gmra.mrb[30].mxu1 %v657_v16 }
 0x111   : > { %1593 = vmatprep.mubr.f32.mxu1 %v658_v13 }
 0x114   : > { %1594 = vmatmul.mubr.f32.gmra.mrb[32].mxu1 %v659_v22 }
 0x115   : > { %1596 = vmatprep.mubr.f32.mxu1 %v660_v20 }
 0x118   : > { %1597 = vmatmul.mubr.f32.gmra.mrb[34].mxu1 %v661_v27 }
 0x119   : > { %1599 = vmatprep.mubr.f32.mxu1 %v662_v25 }
 0x11c   : > { %1600 = vmatmul.mubr.f32.gmra.mrb[36].mxu1 %v663_v30 }
 0x11d   : > { %1602 = vmatprep.mubr.f32.mxu1 %v664_v28 }
 0x120   : > { %1603 = vmatmul.mubr.f32.gmra.mrb[38].mxu1 %v665_v34 }
 0x121   : > { %1605 = vmatprep.mubr.f32.mxu1 %v666_v33 }
 0x124   : > { %1606 = vmatmul.mubr.f32.gmra.mrb[40].mxu1 %v667_v38 }
 0x125   : > { %1608 = vmatprep.mubr.f32.mxu1 %v668_v36 }
 0x128   : > { %1609 = vmatmul.mubr.f32.gmra.mrb[42].mxu1 %v669_v42 }
 0x129   : > { %1611 = vmatprep.mubr.f32.mxu1 %v670_v40 }
 0x12c   : > { %1612 = vmatmul.mubr.f32.gmra.mrb[44].mxu1 %v671_v45 }
 0x12d   : > { %1614 = vmatprep.mubr.f32.mxu1 %v672_v44 }
 0x130   : > { %1615 = vmatmul.mubr.f32.gmra.mrb[46].mxu1 %v673_v47 }
 0x1c7   : > { %v1571_v14 = vpop.f32.mrb[16].mxu1 }
 0x1c8   : > { %v769_v52 = vadd.f32 %v1571_v14, %v2177_v51  ;;  %v763_v53 = vpop.f32.mrb[17].mxu1 }
 0x1c9   : > { %v764_v54 = vadd.f32 %v2177_v51, %v763_v53 }
 0x1ca   : > { %v923_v57 = vmax.f32 %v769_v52, 0.0 }
 0x1cb   : > { %v922_v55 = vmax.f32 %v764_v54, 0.0  ;;  %v1574_v56 = vpop.f32.mrb[18].mxu1 }
 0x1cc   : > { %v779_v58 = vadd.f32 %v1574_v56, %v2177_v51  ;;  %v773_v59 = vpop.f32.mrb[19].mxu1 }
 0x1cd   : > { %v774_v60 = vadd.f32 %v2177_v51, %v773_v59  ;;  %1649 = vmatprep.mubr.f32.mxu0 %v922_v55 }
 0x1ce   : > { %1650 = vmatmul.mubr.f32.vlgmr.msra.gmra.mrb[16].mxu0 %v923_v57  ;;  %v925_v63 = vmax.f32 %v779_v58, 0.0 }
 0x1cf   : > { %v924_v61 = vmax.f32 %v774_v60, 0.0  ;;  %v1577_v62 = vpop.f32.mrb[20].mxu1 }
 0x1d0   : > { %v789_v0 = vadd.f32 %v1577_v62, %v2177_v51  ;;  %v783_v1 = vpop.f32.mrb[21].mxu1 }
 0x1d1   : > { %v784_v2 = vadd.f32 %v2177_v51, %v783_v1  ;;  %1652 = vmatprep.mubr.f32.mxu0 %v924_v61 }
 0x1d2   : > { %1653 = vmatmul.mubr.f32.gmra.mrb[18].mxu0 %v925_v63  ;;  %v927_v5 = vmax.f32 %v789_v0, 0.0 }
 0x1d3   : > { %v926_v3 = vmax.f32 %v784_v2, 0.0  ;;  %v1580_v4 = vpop.f32.mrb[22].mxu1 }
 0x1d4   : > { %v799_v6 = vadd.f32 %v1580_v4, %v2177_v51  ;;  %v793_v7 = vpop.f32.mrb[23].mxu1 }
 0x1d5   : > { %v794_v8 = vadd.f32 %v2177_v51, %v793_v7  ;;  %1655 = vmatprep.mubr.f32.mxu0 %v926_v3 }
 0x1d6   : > { %1656 = vmatmul.mubr.f32.gmra.mrb[20].mxu0 %v927_v5  ;;  %v929_v11 = vmax.f32 %v799_v6, 0.0 }
 0x1d7   : > { %v928_v9 = vmax.f32 %v794_v8, 0.0  ;;  %v1583_v10 = vpop.f32.mrb[24].mxu1 }
 0x1d8   : > { %v809_v12 = vadd.f32 %v1583_v10, %v2177_v51  ;;  %v803_v13 = vpop.f32.mrb[25].mxu1 }
 0x1d9   : > { %v804_v15 = vadd.f32 %v2177_v51, %v803_v13  ;;  %1658 = vmatprep.mubr.f32.mxu0 %v928_v9 }
 0x1da   : > { %1659 = vmatmul.mubr.f32.gmra.mrb[22].mxu0 %v929_v11  ;;  %v931_v18 = vmax.f32 %v809_v12, 0.0 }
 0x1db   : > { %v930_v16 = vmax.f32 %v804_v15, 0.0  ;;  %v1586_v17 = vpop.f32.mrb[26].mxu1 }
 0x1dc   : > { %v819_v19 = vadd.f32 %v1586_v17, %v2177_v51  ;;  %v813_v20 = vpop.f32.mrb[27].mxu1 }
 0x1dd   : > { %v814_v21 = vadd.f32 %v2177_v51, %v813_v20  ;;  %1661 = vmatprep.mubr.f32.mxu0 %v930_v16 }
 0x1de   : > { %1662 = vmatmul.mubr.f32.gmra.mrb[24].mxu0 %v931_v18  ;;  %v933_v25 = vmax.f32 %v819_v19, 0.0 }
 0x1df   : > { %v932_v22 = vmax.f32 %v814_v21, 0.0  ;;  %v1589_v23 = vpop.f32.mrb[28].mxu1  ;;  %v2217_v21 = vld [vmem:[%s2343_s6] ss:$0 sm:$0xff] }
 0x1e0   : > { %v829_v26 = vadd.f32 %v1589_v23, %v2177_v51  ;;  %v823_v27 = vpop.f32.mrb[29].mxu1 }
 0x1e1   : > { %v824_v24 = vadd.f32 %v2177_v51, %v823_v27  ;;  %1664 = vmatprep.mubr.f32.mxu0 %v932_v22 }
 0x1e2   : > { %1665 = vmatmul.mubr.f32.gmra.mrb[26].mxu0 %v933_v25  ;;  %v935_v30 = vmax.f32 %v829_v26, 0.0 }
 0x1e3   : > { %v934_v28 = vmax.f32 %v824_v24, 0.0  ;;  %v1592_v29 = vpop.f32.mrb[30].mxu1 }
 0x1e4   : > { %v839_v31 = vadd.f32 %v1592_v29, %v2177_v51  ;;  %v833_v33 = vpop.f32.mrb[31].mxu1 }
 0x1e5   : > { %v834_v32 = vadd.f32 %v2177_v51, %v833_v33  ;;  %1667 = vmatprep.mubr.f32.mxu0 %v934_v28 }
 0x1e6   : > { %1668 = vmatmul.mubr.f32.gmra.mrb[28].mxu0 %v935_v30  ;;  %v937_v36 = vmax.f32 %v839_v31, 0.0 }
 0x1e7   : > { %v936_v34 = vmax.f32 %v834_v32, 0.0  ;;  %v1595_v35 = vpop.f32.mrb[32].mxu1 }
 0x1e8   : > { %v849_v37 = vadd.f32 %v1595_v35, %v2177_v51  ;;  %v843_v38 = vpop.f32.mrb[33].mxu1 }
 0x1e9   : > { %v844_v39 = vadd.f32 %v2177_v51, %v843_v38  ;;  %1670 = vmatprep.mubr.f32.mxu0 %v936_v34 }
 0x1ea   : > { %1671 = vmatmul.mubr.f32.gmra.mrb[30].mxu0 %v937_v36  ;;  %v939_v42 = vmax.f32 %v849_v37, 0.0 }
 0x1eb   : > { %v938_v40 = vmax.f32 %v844_v39, 0.0  ;;  %v1598_v41 = vpop.f32.mrb[34].mxu1 }
 0x1ec   : > { %v859_v43 = vadd.f32 %v1598_v41, %v2177_v51  ;;  %v853_v44 = vpop.f32.mrb[35].mxu1 }
 0x1ed   : > { %v854_v45 = vadd.f32 %v2177_v51, %v853_v44  ;;  %1673 = vmatprep.mubr.f32.mxu0 %v938_v40 }
 0x1ee   : > { %1674 = vmatmul.mubr.f32.gmra.mrb[32].mxu0 %v939_v42  ;;  %v941_v48 = vmax.f32 %v859_v43, 0.0 }
 0x1ef   : > { %v940_v46 = vmax.f32 %v854_v45, 0.0  ;;  %v1601_v47 = vpop.f32.mrb[36].mxu1 }
 0x1f0   : > { %v869_v49 = vadd.f32 %v1601_v47, %v2177_v51  ;;  %v863_v50 = vpop.f32.mrb[37].mxu1 }
 0x1f1   : > { %v864_v14 = vadd.f32 %v2177_v51, %v863_v50  ;;  %1676 = vmatprep.mubr.f32.mxu0 %v940_v46 }
 0x1f2   : > { %1677 = vmatmul.mubr.f32.gmra.mrb[34].mxu0 %v941_v48  ;;  %v943_v54 = vmax.f32 %v869_v49, 0.0 }
 0x1f3   : > { %v942_v52 = vmax.f32 %v864_v14, 0.0  ;;  %v1604_v53 = vpop.f32.mrb[38].mxu1 }
 0x1f4   : > { %v879_v55 = vadd.f32 %v1604_v53, %v2177_v51  ;;  %v873_v56 = vpop.f32.mrb[39].mxu1 }
 0x1f5   : > { %v874_v57 = vadd.f32 %v2177_v51, %v873_v56  ;;  %1679 = vmatprep.mubr.f32.mxu0 %v942_v52 }
 0x1f6   : > { %1680 = vmatmul.mubr.f32.gmra.mrb[36].mxu0 %v943_v54  ;;  %v945_v60 = vmax.f32 %v879_v55, 0.0 }
 0x1f7   : > { %v944_v58 = vmax.f32 %v874_v57, 0.0  ;;  %v1607_v59 = vpop.f32.mrb[40].mxu1 }
 0x1f8   : > { %v889_v61 = vadd.f32 %v1607_v59, %v2177_v51  ;;  %v883_v62 = vpop.f32.mrb[41].mxu1 }
 0x1f9   : > { %v884_v63 = vadd.f32 %v2177_v51, %v883_v62  ;;  %1682 = vmatprep.mubr.f32.mxu0 %v944_v58 }
 0x1fa   : > { %1683 = vmatmul.mubr.f32.gmra.mrb[38].mxu0 %v945_v60  ;;  %v947_v2 = vmax.f32 %v889_v61, 0.0 }
 0x1fb   : > { %v946_v0 = vmax.f32 %v884_v63, 0.0  ;;  %v1610_v1 = vpop.f32.mrb[42].mxu1 }
 0x1fc   : > { %v899_v3 = vadd.f32 %v1610_v1, %v2177_v51  ;;  %v893_v4 = vpop.f32.mrb[43].mxu1 }
 0x1fd   : > { %v894_v5 = vadd.f32 %v2177_v51, %v893_v4  ;;  %1685 = vmatprep.mubr.f32.mxu0 %v946_v0 }
 0x1fe   : > { %1686 = vmatmul.mubr.f32.gmra.mrb[40].mxu0 %v947_v2  ;;  %v949_v8 = vmax.f32 %v899_v3, 0.0 }
 0x1ff   : > { %v948_v6 = vmax.f32 %v894_v5, 0.0  ;;  %v1613_v7 = vpop.f32.mrb[44].mxu1 }
 0x200   : > { %v909_v9 = vadd.f32 %v1613_v7, %v2177_v51  ;;  %v903_v10 = vpop.f32.mrb[45].mxu1 }
 0x201   : > { %v904_v11 = vadd.f32 %v2177_v51, %v903_v10  ;;  %1688 = vmatprep.mubr.f32.mxu0 %v948_v6 }
 0x202   : > { %1689 = vmatmul.mubr.f32.gmra.mrb[42].mxu0 %v949_v8  ;;  %v951_v15 = vmax.f32 %v909_v9, 0.0 }
 0x203   : > { %v950_v12 = vmax.f32 %v904_v11, 0.0  ;;  %v1616_v13 = vpop.f32.mrb[46].mxu1 }
 0x204   : > { %v919_v16 = vadd.f32 %v1616_v13, %v2177_v51  ;;  %v913_v17 = vpop.f32.mrb[47].mxu1 }
 0x205   : > { %v914_v18 = vadd.f32 %v2177_v51, %v913_v17  ;;  %1691 = vmatprep.mubr.f32.mxu0 %v950_v12 }
 0x206   : > { %1692 = vmatmul.mubr.f32.gmra.mrb[44].mxu0 %v951_v15  ;;  %v953_v20 = vmax.f32 %v919_v16, 0.0 }
 0x207   : > { %v952_v19 = vmax.f32 %v914_v18, 0.0 }
 0x209   : > { %1694 = vmatprep.mubr.f32.mxu0 %v952_v19 }
 0x20a   : > { %1695 = vmatmul.mubr.f32.gmra.mrb[46].mxu0 %v953_v20 }
 0x2a1   : > { %v1651_v22 = vpop.f32.mrb[16].mxu0 }
 0x2a2   : > { %v1049_v23 = vadd.f32 %v1651_v22, %v2217_v21  ;;  %v1043_v25 = vpop.f32.mrb[17].mxu0 }
 0x2a3   : > { %v1044_v51 = vadd.f32 %v2217_v21, %v1043_v25 }
 0x2a4   : > { %1203 = vst [vmem:[%s2221_s29 + $0x8] sm:$0xff] %v1049_v23 }
 0x2a5   : > { %1202 = vst [vmem:[%s2221_s29] sm:$0xff] %v1044_v51  ;;  %v1654_v26 = vpop.f32.mrb[18].mxu0 }
 0x2a6   : > { %v1059_v27 = vadd.f32 %v1654_v26, %v2217_v21  ;;  %v1053_v24 = vpop.f32.mrb[19].mxu0 }
 0x2a7   : > { %v1054_v28 = vadd.f32 %v2217_v21, %v1053_v24 }
 0x2a8   : > { %1205 = vst [vmem:[%s2221_s29 + $0x18] sm:$0xff] %v1059_v27 }
 0x2a9   : > { %1204 = vst [vmem:[%s2221_s29 + $0x10] sm:$0xff] %v1054_v28  ;;  %v1657_v29 = vpop.f32.mrb[20].mxu0 }
 0x2aa   : > { %v1069_v30 = vadd.f32 %v1657_v29, %v2217_v21  ;;  %v1063_v31 = vpop.f32.mrb[21].mxu0 }
 0x2ab   : > { %v1064_v33 = vadd.f32 %v2217_v21, %v1063_v31 }
 0x2ac   : > { %1207 = vst [vmem:[%s2221_s29 + $0x28] sm:$0xff] %v1069_v30 }
 0x2ad   : > { %1206 = vst [vmem:[%s2221_s29 + $0x20] sm:$0xff] %v1064_v33  ;;  %v1660_v32 = vpop.f32.mrb[22].mxu0 }
 0x2ae   : > { %v1079_v34 = vadd.f32 %v1660_v32, %v2217_v21  ;;  %v1073_v35 = vpop.f32.mrb[23].mxu0 }
 0x2af   : > { %v1074_v36 = vadd.f32 %v2217_v21, %v1073_v35 }
 0x2b0   : > { %1209 = vst [vmem:[%s2221_s29 + $0x38] sm:$0xff] %v1079_v34 }
 0x2b1   : > { %1208 = vst [vmem:[%s2221_s29 + $0x30] sm:$0xff] %v1074_v36  ;;  %v1663_v37 = vpop.f32.mrb[24].mxu0 }
 0x2b2   : > { %v1089_v38 = vadd.f32 %v1663_v37, %v2217_v21  ;;  %v1083_v39 = vpop.f32.mrb[25].mxu0 }
 0x2b3   : > { %v1084_v40 = vadd.f32 %v2217_v21, %v1083_v39 }
 0x2b4   : > { %1211 = vst [vmem:[%s2221_s29 + $0x48] sm:$0xff] %v1089_v38 }
 0x2b5   : > { %1210 = vst [vmem:[%s2221_s29 + $0x40] sm:$0xff] %v1084_v40  ;;  %v1666_v41 = vpop.f32.mrb[26].mxu0 }
 0x2b6   : > { %v1099_v42 = vadd.f32 %v1666_v41, %v2217_v21  ;;  %v1093_v43 = vpop.f32.mrb[27].mxu0 }
 0x2b7   : > { %v1094_v44 = vadd.f32 %v2217_v21, %v1093_v43 }
 0x2b8   : > { %1213 = vst [vmem:[%s2221_s29 + $0x58] sm:$0xff] %v1099_v42 }
 0x2b9   : > { %1212 = vst [vmem:[%s2221_s29 + $0x50] sm:$0xff] %v1094_v44  ;;  %v1669_v45 = vpop.f32.mrb[28].mxu0 }
 0x2ba   : > { %v1109_v46 = vadd.f32 %v1669_v45, %v2217_v21  ;;  %v1103_v47 = vpop.f32.mrb[29].mxu0 }
 0x2bb   : > { %v1104_v48 = vadd.f32 %v2217_v21, %v1103_v47 }
 0x2bc   : > { %1215 = vst [vmem:[%s2221_s29 + $0x68] sm:$0xff] %v1109_v46 }
 0x2bd   : > { %1214 = vst [vmem:[%s2221_s29 + $0x60] sm:$0xff] %v1104_v48  ;;  %v1672_v49 = vpop.f32.mrb[30].mxu0 }
 0x2be   : > { %v1119_v50 = vadd.f32 %v1672_v49, %v2217_v21  ;;  %v1113_v14 = vpop.f32.mrb[31].mxu0 }
 0x2bf   : > { %v1114_v52 = vadd.f32 %v2217_v21, %v1113_v14 }
 0x2c0   : > { %1217 = vst [vmem:[%s2221_s29 + $0x78] sm:$0xff] %v1119_v50 }
 0x2c1   : > { %1216 = vst [vmem:[%s2221_s29 + $0x70] sm:$0xff] %v1114_v52  ;;  %v1675_v53 = vpop.f32.mrb[32].mxu0 }
 0x2c2   : > { %v1129_v54 = vadd.f32 %v1675_v53, %v2217_v21  ;;  %v1123_v55 = vpop.f32.mrb[33].mxu0 }
 0x2c3   : > { %v1124_v56 = vadd.f32 %v2217_v21, %v1123_v55 }
 0x2c4   : > { %1219 = vst [vmem:[%s2221_s29 + $0x88] sm:$0xff] %v1129_v54 }
 0x2c5   : > { %1218 = vst [vmem:[%s2221_s29 + $0x80] sm:$0xff] %v1124_v56  ;;  %v1678_v57 = vpop.f32.mrb[34].mxu0 }
 0x2c6   : > { %v1139_v58 = vadd.f32 %v1678_v57, %v2217_v21  ;;  %v1133_v59 = vpop.f32.mrb[35].mxu0 }
 0x2c7   : > { %v1134_v60 = vadd.f32 %v2217_v21, %v1133_v59 }
 0x2c8   : > { %1221 = vst [vmem:[%s2221_s29 + $0x98] sm:$0xff] %v1139_v58 }
 0x2c9   : > { %1220 = vst [vmem:[%s2221_s29 + $0x90] sm:$0xff] %v1134_v60  ;;  %v1681_v61 = vpop.f32.mrb[36].mxu0 }
 0x2ca   : > { %v1149_v62 = vadd.f32 %v1681_v61, %v2217_v21  ;;  %v1143_v63 = vpop.f32.mrb[37].mxu0 }
 0x2cb   : > { %v1144_v0 = vadd.f32 %v2217_v21, %v1143_v63 }
 0x2cc   : > { %1223 = vst [vmem:[%s2221_s29 + $0xa8] sm:$0xff] %v1149_v62 }
 0x2cd   : > { %1222 = vst [vmem:[%s2221_s29 + $0xa0] sm:$0xff] %v1144_v0  ;;  %v1684_v1 = vpop.f32.mrb[38].mxu0 }
 0x2ce   : > { %v1159_v2 = vadd.f32 %v1684_v1, %v2217_v21  ;;  %v1153_v3 = vpop.f32.mrb[39].mxu0 }
 0x2cf   : > { %v1154_v4 = vadd.f32 %v2217_v21, %v1153_v3 }
 0x2d0   : > { %1225 = vst [vmem:[%s2221_s29 + $0xb8] sm:$0xff] %v1159_v2 }
 0x2d1   : > { %1224 = vst [vmem:[%s2221_s29 + $0xb0] sm:$0xff] %v1154_v4  ;;  %v1687_v5 = vpop.f32.mrb[40].mxu0 }
 0x2d2   : > { %v1169_v6 = vadd.f32 %v1687_v5, %v2217_v21  ;;  %v1163_v7 = vpop.f32.mrb[41].mxu0 }
 0x2d3   : > { %v1164_v8 = vadd.f32 %v2217_v21, %v1163_v7 }
 0x2d4   : > { %1227 = vst [vmem:[%s2221_s29 + $0xc8] sm:$0xff] %v1169_v6 }
 0x2d5   : > { %1226 = vst [vmem:[%s2221_s29 + $0xc0] sm:$0xff] %v1164_v8  ;;  %v1690_v9 = vpop.f32.mrb[42].mxu0 }
 0x2d6   : > { %v1179_v10 = vadd.f32 %v1690_v9, %v2217_v21  ;;  %v1173_v11 = vpop.f32.mrb[43].mxu0 }
 0x2d7   : > { %v1174_v12 = vadd.f32 %v2217_v21, %v1173_v11 }
 0x2d8   : > { %1229 = vst [vmem:[%s2221_s29 + $0xd8] sm:$0xff] %v1179_v10 }
 0x2d9   : > { %1228 = vst [vmem:[%s2221_s29 + $0xd0] sm:$0xff] %v1174_v12  ;;  %v1693_v13 = vpop.f32.mrb[44].mxu0 }
 0x2da   : > { %v1189_v15 = vadd.f32 %v1693_v13, %v2217_v21  ;;  %v1183_v16 = vpop.f32.mrb[45].mxu0 }
 0x2db   : > { %v1184_v17 = vadd.f32 %v2217_v21, %v1183_v16 }
 0x2dc   : > { %1231 = vst [vmem:[%s2221_s29 + $0xe8] sm:$0xff] %v1189_v15 }
 0x2dd   : > { %1230 = vst [vmem:[%s2221_s29 + $0xe0] sm:$0xff] %v1184_v17  ;;  %v1696_v18 = vpop.f32.mrb[46].mxu0 }
 0x2de   : > { %v1199_v19 = vadd.f32 %v1696_v18, %v2217_v21  ;;  %v1193_v20 = vpop.f32.mrb[47].mxu0 }
 0x2df   : > { %v1194_v22 = vadd.f32 %v2217_v21, %v1193_v20 }
 0x2e0   : > { %1233 = vst [vmem:[%s2221_s29 + $0xf8] sm:$0xff] %v1199_v19 }
 0x2e1   : > { %1232 = vst [vmem:[%s2221_s29 + $0xf0] sm:$0xff] %v1194_v22 }
 0x2e2   : > { %1817 = shalt.err (!%p1814_p3)
}
 0x2e3   : > { %s1818_s19 = scalar_lea.hbm %s2287_s23, 4096  ;;  %s1822_s22 = scalar_lea.hbm %s2344_s7, 8192 }
 0x2e4   : > { %p1819_p4 = scmp.ne.s32.totalorder %s2287_s23, %s1818_s19  ;;  %p1823_p9 = scmp.lt.u32.totalorder %s2287_s23, %s2344_s7 }
 0x2e5   : > { %p1824_p10 = scmp.lt.u32.totalorder %s1822_s22, %s1818_s19  ;;  %p1826_p12 = scmp.lt.u32.totalorder %s1818_s19, %s2287_s23 }
 0x2e6   : > { %p1820_p7 = pnand %p1819_p4, %p1949_p5 }
 0x2e7   : > { %p1825_p11 = por %p1824_p10, %p1823_p9 }
 0x2e8   : > { %p1821_p8 = pneg %p1820_p7 }
 0x2e9   : > { %p1827_p13 = por %p1826_p12, %p1825_p11 }
 0x2eb   : > { %p1828_p0 = pnand %p1827_p13, %p1821_p8 }
 0x2ed   : > { %1831 = shalt.err (!%p1828_p0)
}
 0x2ee   : > { %s1869_s13 = smov 128   ;;  %s1870_s14 = smov 8  }
 0x2ef   : > { %1763 = dma.vmem_to_hbm [thread:$0]  (%p1949_p5), %s2289_s9, 4096, %s2287_s23, %s2296_s28, %s1869_s13, %s1869_s13, %s1870_s14  }
 0x2f0 PF: > { %p1769_p1 = scmp.ge.s32.totalorder %s1866_s27, 2  ;;  %s1263_s15 = sand.u32 1, %s1854_s24  }
 0x2f1   : > { %s1264_s16 = scalar_lea.sflag [#allocation3], %s1263_s15 }
 0x2f2   : > { %p1766_p2 = pnand %p1769_p1, %p1953_p6 }
 0x2f4   : > { %1849 = dma.done.wait (!%p1766_p2), %s1264_s16, 4096  }
 0x2f5   : > { %1851 = vsyncadd (!%p1766_p2), %s1264_s16, 4294963200  ;;  %p17_p3 = scmp.ge.s32.totalorder %s1936_s30, 4   ;;  %s2347_s24 = smov %s1858_s25 }
 0x2f6   : > { %s2348_s25 = smov %s1862_s26  ;;  %s2349_s26 = smov %s1947_s10 }
 0x2f7   : > { %s2350_s27 = smov %s1936_s30  ;;  %19 = sbr.rel (!%p17_p3) target bundleno = 3 (0x3), region = 83 }
 0x2fe   :  { %1269 = vsyncpa [#allocation3], 1 }
 0x2ff   :  { %1271 = vsyncpa [#allocation3 + $0x1], 1 }

</bundles_post_ra>
